<compile_context>
chip_gen: v5e
topology: v5e:2x2
jax: 0.10.0
libtpu: 0.0.40
codegen_flags: <defaults>
</compile_context>

<pallas_src>
import functools

import jax
import jax.numpy as jnp
from jax import lax
from jax.experimental import pallas as pl
from jax.experimental.pallas import tpu as pltpu

_LANE = 128  # TPU lane width; halo regions are one 128-wide block on each side


def _round_up(x, m):
    return ((x + m - 1) // m) * m


def _subblock_kernel(xm_ref, xl_ref, xr_ref, w_ref, b_ref, *rest,
                     K, pad_l, tile_t, T, has_residual):
    # xm_ref : (1, Cin, tile_t)   main input tile (native dtype, unpadded x)
    # xl_ref : (1, Cin, 128)      128 cols just left of the tile (ignored for i==0)
    # xr_ref : (1, Cin, 128)      128 cols just right of the tile (clamped at end)
    # w_ref  : (K, Cout, Cin)     per-tap pointwise weights, BN scale folded in
    # b_ref  : (Cout, 1)          folded bias (dw bias + pw bias + BN shift), f32
    # rest   : [res_ref,] o_ref, xwin_ref
    if has_residual:
        res_ref, o_ref, xwin_ref = rest
    else:
        o_ref, xwin_ref = rest

    cdt = xwin_ref.dtype
    n_cin = xm_ref.shape[1]

    i = pl.program_id(0)                 # time-tile index
    t0 = i * tile_t                      # first input/output frame of this tile
    valid_main = T - t0                  # valid cols in the main tile (>= tile_t interior)
    valid_right = T - (t0 + tile_t)      # valid cols in the right halo (may be <= 0)

    # ---- Assemble the FIR window [left 128 | main tile | right 128] in VMEM.
    #      Boundary tiles get masked (zeros == 'same' padding); interior tiles
    #      do a straight cast+copy.
    @pl.when(i == 0)
    def _():
        xwin_ref[:, :_LANE] = jnp.zeros((n_cin, _LANE), cdt)   # left 'same' padding

    @pl.when(i > 0)
    def _():
        xwin_ref[:, :_LANE] = xl_ref[0].astype(cdt)

    main = xm_ref[0]

    @pl.when(valid_main >= tile_t)
    def _():
        xwin_ref[:, _LANE:_LANE + tile_t] = main.astype(cdt)

    @pl.when(valid_main < tile_t)
    def _():
        col = lax.broadcasted_iota(jnp.int32, (n_cin, tile_t), 1)
        xwin_ref[:, _LANE:_LANE + tile_t] = jnp.where(
            col < valid_main, main, 0).astype(cdt)

    right = xr_ref[0]

    @pl.when(valid_right >= _LANE)
    def _():
        xwin_ref[:, _LANE + tile_t:] = right.astype(cdt)

    @pl.when(valid_right < _LANE)
    def _():
        col = lax.broadcasted_iota(jnp.int32, (n_cin, _LANE), 1)
        xwin_ref[:, _LANE + tile_t:] = jnp.where(
            col < valid_right, right, 0).astype(cdt)

    # ---- Depthwise + pointwise + BN, all on the MXU:
    #      y[o, t] = sum_k ( W_k @ window[:, k : k + tile_t] )[o, t]
    # Accumulated in f32.  For very large K an im2col-stacked single dot (one
    # long contraction, MRB-accumulated) would cut accumulator traffic further.
    acc = None
    for k in range(K):
        off = _LANE - pad_l + k          # static offset -> Mosaic lane rotation
        part = lax.dot_general(
            w_ref[k], xwin_ref[:, off:off + tile_t],
            dimension_numbers=(((1,), (0,)), ((), ())),
            preferred_element_type=jnp.float32)
        acc = part if acc is None else acc + part

    y = acc + b_ref[...]                 # (Cout, 1) broadcast along lanes
    if has_residual:
        y = y + res_ref[0].astype(jnp.float32)
    y = jnp.maximum(y, 0.0)
    # TODO(synk): nn.Dropout is stochastic in train mode; identity here (eval).
    o_ref[0] = y.astype(o_ref.dtype)


def subblock_forward(x_ncw, params, residual_ncw=None, *, eps=1e-5,
                     max_tile_t=4096, compute_dtype=jnp.float32,
                     out_dtype=None, vmem_budget_bytes=24 * 1024 * 1024):
    """SubBlock forward pass.

    x_ncw:        (N, C_in, T)  -- PyTorch NCW layout (time last, lane axis).
    residual_ncw: (N, C_out, T) or None.
    Returns       (N, C_out, T) in out_dtype (default: x dtype).
    """
    w_dw, b_dw, w_pw, b_pw, gamma, beta, run_mean, run_var = params
    N, Cin, T = x_ncw.shape
    K = w_dw.shape[-1]
    Cout = w_pw.shape[0]
    pad_l = (K - 1) // 2
    pad_r = K - 1 - pad_l
    assert pad_l <= _LANE and pad_r <= _LANE, "kernel_size too large for 128-frame halos"
    if out_dtype is None:
        out_dtype = x_ncw.dtype
    has_residual = residual_ncw is not None

    # ---- Fold BatchNorm (eval) + both conv biases into per-tap pointwise weights.
    #      (All tiny arrays: no full-tensor HBM traffic in the wrapper.)
    wdw = w_dw[:, 0, :].astype(jnp.float32)                    # (Cin, K)
    wpw = w_pw[:, :, 0].astype(jnp.float32)                    # (Cout, Cin)
    scale = gamma.astype(jnp.float32) / jnp.sqrt(run_var.astype(jnp.float32) + eps)
    shift = beta.astype(jnp.float32) - run_mean.astype(jnp.float32) * scale
    wpw_f = wpw * scale[:, None]                               # (Cout, Cin)
    # W_k[o, c] = wpw_f[o, c] * wdw[c, k]   ->   stacked (K, Cout, Cin)
    w_taps = (wpw_f[None, :, :] * jnp.transpose(wdw)[:, None, :]).astype(compute_dtype)
    bias_f = (wpw_f @ b_dw.astype(jnp.float32)
              + scale * b_pw.astype(jnp.float32) + shift)[:, None]   # (Cout, 1) f32

    # ---- Time tiling: lane-aligned tiles, capped by a VMEM budget.
    x_bytes = jnp.dtype(x_ncw.dtype).itemsize
    c_bytes = jnp.dtype(compute_dtype).itemsize
    o_bytes = jnp.dtype(out_dtype).itemsize
    r_bytes = jnp.dtype(residual_ncw.dtype).itemsize if has_residual else 0

    def footprint(tt):
        dbuf = 2 * (Cin * tt * x_bytes                 # main x tile
                    + 2 * Cin * _LANE * x_bytes        # halos
                    + Cout * tt * o_bytes              # output
                    + Cout * tt * r_bytes)             # residual
        return dbuf + Cin * (tt + 2 * _LANE) * c_bytes + 2 * K * Cout * Cin * c_bytes

    tile_t = min(_round_up(T, _LANE), _round_up(max_tile_t, _LANE))
    while tile_t > _LANE and footprint(tile_t) > vmem_budget_bytes:
        tile_t = _round_up(tile_t // 2, _LANE)
    n_tiles = (T + tile_t - 1) // tile_t
    hb = tile_t // _LANE                               # 128-blocks per tile
    max_rb = max((T + _LANE - 1) // _LANE - 1, 0)      # last valid 128-block of x

    xm_spec = pl.BlockSpec((1, Cin, tile_t), lambda i, n: (n, 0, i))
    xl_spec = pl.BlockSpec((1, Cin, _LANE),
                           lambda i, n: (n, 0, jnp.maximum(i * hb - 1, 0)))
    xr_spec = pl.BlockSpec((1, Cin, _LANE),
                           lambda i, n: (n, 0, jnp.minimum((i + 1) * hb, max_rb)))
    w_spec = pl.BlockSpec((K, Cout, Cin), lambda i, n: (0, 0, 0))
    b_spec = pl.BlockSpec((Cout, 1), lambda i, n: (0, 0))
    out_spec = pl.BlockSpec((1, Cout, tile_t), lambda i, n: (n, 0, i))

    in_specs = [xm_spec, xl_spec, xr_spec, w_spec, b_spec]
    inputs = [x_ncw, x_ncw, x_ncw, w_taps, bias_f]
    if has_residual:
        in_specs.append(pl.BlockSpec((1, Cout, tile_t), lambda i, n: (n, 0, i)))
        inputs.append(residual_ncw)

    kernel = functools.partial(_subblock_kernel, K=K, pad_l=pad_l, tile_t=tile_t,
                               T=T, has_residual=has_residual)

    vmem_limit = int(min(max(32 * 1024 * 1024, 2 * footprint(tile_t)),
                         64 * 1024 * 1024))

    return pl.pallas_call(
        kernel,
        grid=(n_tiles, N),        # time tiles first: v7x megacore shards them at small N
        in_specs=in_specs,
        out_specs=out_spec,
        out_shape=jax.ShapeDtypeStruct((N, Cout, T), out_dtype),
        scratch_shapes=[pltpu.VMEM((Cin, tile_t + 2 * _LANE), compute_dtype)],
        compiler_params=pltpu.CompilerParams(
            dimension_semantics=("parallel", "parallel"),
            vmem_limit_bytes=vmem_limit,
        ),
    )(*inputs)


def init_params(key, in_channels, out_channels, kernel_size):
    """Deterministic synthetic parameters matching the PyTorch module shapes."""
    ks = jax.random.split(key, 6)
    w_dw = jax.random.normal(ks[0], (in_channels, 1, kernel_size), jnp.float32) * 0.3
    b_dw = jax.random.normal(ks[1], (in_channels,), jnp.float32) * 0.1
    w_pw = jax.random.normal(ks[2], (out_channels, in_channels, 1), jnp.float32) * 0.3
    b_pw = jax.random.normal(ks[3], (out_channels,), jnp.float32) * 0.1
    gamma = 1.0 + 0.1 * jax.random.normal(ks[4], (out_channels,), jnp.float32)
    beta = 0.1 * jax.random.normal(ks[5], (out_channels,), jnp.float32)
    run_mean = jnp.zeros((out_channels,), jnp.float32)
    run_var = jnp.ones((out_channels,), jnp.float32)
    return (w_dw, b_dw, w_pw, b_pw, gamma, beta, run_mean, run_var)


def _reference_forward(x_ncw, params, residual_ncw=None, eps=1e-5):
    """Plain-JAX reference (matches PyTorch eval semantics)."""
    w_dw, b_dw, w_pw, b_pw, gamma, beta, run_mean, run_var = params
    N, Cin, T = x_ncw.shape
    K = w_dw.shape[-1]
    pad_l = (K - 1) // 2
    pad_r = K - 1 - pad_l
    xp = jnp.pad(x_ncw, ((0, 0), (0, 0), (pad_l, pad_r)))
    dw = jnp.zeros((N, Cin, T), jnp.float32)
    for k in range(K):
        dw = dw + xp[:, :, k:k + T] * w_dw[None, :, 0, k:k + 1]
    dw = dw + b_dw[None, :, None]
    pw = jnp.einsum('nct,oc->not', dw, w_pw[:, :, 0]) + b_pw[None, :, None]
    y = (pw - run_mean[None, :, None]) / jnp.sqrt(run_var[None, :, None] + eps)
    y = y * gamma[None, :, None] + beta[None, :, None]
    if residual_ncw is not None:
        y = y + residual_ncw
    return jnp.maximum(y, 0.0)


if __name__ == "__main__":
    key = jax.random.PRNGKey(0)
    kx, kr, kp, kx2 = jax.random.split(key, 4)

    # Case 1: small shapes, with residual, single time tile (T < 128 -> tail mask).
    N, Cin, Cout, T, K = 2, 4, 8, 16, 3
    x = jax.random.normal(kx, (N, Cin, T), jnp.float32)          # NCW like PyTorch
    residual = jax.random.normal(kr, (N, Cout, T), jnp.float32)  # same shape as output
    params = init_params(kp, Cin, Cout, K)

    out = jax.block_until_ready(subblock_forward(x, params, residual))
    ref = _reference_forward(x, params, residual)
    assert out.shape == (N, Cout, T)
    assert jnp.allclose(out, ref, atol=1e-4, rtol=1e-4), "mismatch vs reference (case 1)"

    # Case 2: multiple time tiles, left/right halos, ragged tail, no residual.
    T2 = 300
    x2 = jax.random.normal(kx2, (N, Cin, T2), jnp.float32)
    out2 = jax.block_until_ready(subblock_forward(x2, params, None, max_tile_t=128))
    ref2 = _reference_forward(x2, params, None)
    assert out2.shape == (N, Cout, T2)
    assert jnp.allclose(out2, ref2, atol=1e-4, rtol=1e-4), "mismatch vs reference (case 2)"

    # Case 3: bf16 MXU operands + bf16 output stream (v6e/v7x production config).
    out3 = jax.block_until_ready(subblock_forward(
        x2, params, None, max_tile_t=256,
        compute_dtype=jnp.bfloat16, out_dtype=jnp.bfloat16))
    assert out3.shape == (N, Cout, T2)
    assert jnp.allclose(out3.astype(jnp.float32), ref2, atol=6e-2, rtol=6e-2), \
        "mismatch vs reference (case 3, bf16)"

    print("KERNEL_OK")
</pallas_src>

<mosaic_0001>
module attributes {stable_mosaic.version = 11 : i64} {
  func.func @_subblock_kernel(%arg0: i32, %arg1: i32, %arg2: memref<1x4x128xf32, #tpu.memory_space<vmem>>, %arg3: memref<1x4x128xf32, #tpu.memory_space<vmem>>, %arg4: memref<1x4x128xf32, #tpu.memory_space<vmem>>, %arg5: memref<3x8x4xf32, #tpu.memory_space<vmem>>, %arg6: memref<8x1xf32, #tpu.memory_space<vmem>>, %arg7: memref<1x8x128xf32, #tpu.memory_space<vmem>>, %arg8: memref<1x8x128xf32, #tpu.memory_space<vmem>>, %arg9: memref<4x384xf32, #tpu.memory_space<vmem>>) attributes {dimension_semantics = [#tpu.dimension_semantics<parallel>, #tpu.dimension_semantics<parallel>], iteration_bounds = array<i64: 1, 2>, scalar_prefetch = 0 : i64, scratch_operands = 1 : i64, tpu.core_type = #tpu.core_type<tc>, window_params = [{transform_indices = @transform_0, window_bounds = array<i64: 1, 4, 128>}, {transform_indices = @transform_1, window_bounds = array<i64: 1, 4, 128>}, {transform_indices = @transform_2, window_bounds = array<i64: 1, 4, 128>}, {pipeline_mode = #tpu.pipeline_mode<synchronous>, transform_indices = @transform_3, window_bounds = array<i64: 3, 8, 4>}, {pipeline_mode = #tpu.pipeline_mode<synchronous>, transform_indices = @transform_4, window_bounds = array<i64: 8, 1>}, {transform_indices = @transform_5, window_bounds = array<i64: 1, 8, 128>}, {transform_indices = @transform_6, window_bounds = array<i64: 1, 8, 128>}]} {
    %c128_i32 = arith.constant 128 : i32
    %0 = arith.muli %arg0, %c128_i32 : i32
    %c16_i32 = arith.constant 16 : i32
    %1 = arith.subi %c16_i32, %0 : i32
    %c128_i32_0 = arith.constant 128 : i32
    %2 = arith.addi %0, %c128_i32_0 : i32
    %c16_i32_1 = arith.constant 16 : i32
    %3 = arith.subi %c16_i32_1, %2 : i32
    %c0_i32 = arith.constant 0 : i32
    %4 = arith.cmpi eq, %arg0, %c0_i32 : i32
    %5 = arith.extui %4 : i1 to i32
    %c0_i32_2 = arith.constant 0 : i32
    %6 = arith.cmpi ne, %5, %c0_i32_2 : i32
    scf.if %6 {
      %cst_39 = arith.constant 0.000000e+00 : f32
      %51 = vector.broadcast %cst_39 : f32 to vector<4x128xf32>
      %c0_40 = arith.constant 0 : index
      %c0_41 = arith.constant 0 : index
      %52 = vector.load %arg9[%c0_40, %c0_41] : memref<4x384xf32, #tpu.memory_space<vmem>>, vector<4x128xf32>
      tpu.vector_store %arg9[%c0_40, %c0_41], %51 {strides = array<i32>} : memref<4x384xf32, #tpu.memory_space<vmem>>, vector<4x128xf32>,
    } else {
    }
    %c0_i32_3 = arith.constant 0 : i32
    %7 = arith.cmpi sgt, %arg0, %c0_i32_3 : i32
    %8 = arith.extui %7 : i1 to i32
    %c0_i32_4 = arith.constant 0 : i32
    %9 = arith.cmpi ne, %8, %c0_i32_4 : i32
    scf.if %9 {
      %c0_39 = arith.constant 0 : index
      %c0_40 = arith.constant 0 : index
      %c0_41 = arith.constant 0 : index
      %51 = vector.load %arg3[%c0_39, %c0_40, %c0_41] : memref<1x4x128xf32, #tpu.memory_space<vmem>>, vector<1x4x128xf32>
      %52 = vector.shape_cast %51 : vector<1x4x128xf32> to vector<4x128xf32>
      %c0_42 = arith.constant 0 : index
      %c0_43 = arith.constant 0 : index
      %53 = vector.load %arg9[%c0_42, %c0_43] : memref<4x384xf32, #tpu.memory_space<vmem>>, vector<4x128xf32>
      tpu.vector_store %arg9[%c0_42, %c0_43], %52 {strides = array<i32>} : memref<4x384xf32, #tpu.memory_space<vmem>>, vector<4x128xf32>,
    } else {
    }
    %c0 = arith.constant 0 : index
    %c0_5 = arith.constant 0 : index
    %c0_6 = arith.constant 0 : index
    %10 = vector.load %arg2[%c0, %c0_5, %c0_6] : memref<1x4x128xf32, #tpu.memory_space<vmem>>, vector<1x4x128xf32>
    %11 = vector.shape_cast %10 : vector<1x4x128xf32> to vector<4x128xf32>
    %c128_i32_7 = arith.constant 128 : i32
    %12 = arith.cmpi sge, %1, %c128_i32_7 : i32
    %13 = arith.extui %12 : i1 to i32
    %c0_i32_8 = arith.constant 0 : i32
    %14 = arith.cmpi ne, %13, %c0_i32_8 : i32
    scf.if %14 {
      %c0_39 = arith.constant 0 : index
      %c128_40 = arith.constant 128 : index
      %51 = vector.load %arg9[%c0_39, %c128_40] : memref<4x384xf32, #tpu.memory_space<vmem>>, vector<4x128xf32>
      tpu.vector_store %arg9[%c0_39, %c128_40], %11 {strides = array<i32>} : memref<4x384xf32, #tpu.memory_space<vmem>>, vector<4x128xf32>,
    } else {
    }
    %c128_i32_9 = arith.constant 128 : i32
    %15 = arith.cmpi slt, %1, %c128_i32_9 : i32
    %16 = arith.extui %15 : i1 to i32
    %c0_i32_10 = arith.constant 0 : i32
    %17 = arith.cmpi ne, %16, %c0_i32_10 : i32
    scf.if %17 {
      %51 = tpu.iota {dimensions = array<i32: 1>} : vector<4x128xi32>
      %52 = vector.broadcast %1 : i32 to vector<4x128xi32>
      %53 = arith.cmpi slt, %51, %52 : vector<4x128xi32>
      %c0_i32_39 = arith.constant 0 : i32
      %54 = arith.sitofp %c0_i32_39 : i32 to f32
      %55 = vector.broadcast %54 : f32 to vector<4x128xf32>
      %56 = arith.select %53, %11, %55 : vector<4x128xi1>, vector<4x128xf32>
      %c0_40 = arith.constant 0 : index
      %c128_41 = arith.constant 128 : index
      %57 = vector.load %arg9[%c0_40, %c128_41] : memref<4x384xf32, #tpu.memory_space<vmem>>, vector<4x128xf32>
      tpu.vector_store %arg9[%c0_40, %c128_41], %56 {strides = array<i32>} : memref<4x384xf32, #tpu.memory_space<vmem>>, vector<4x128xf32>,
    } else {
    }
    %c0_11 = arith.constant 0 : index
    %c0_12 = arith.constant 0 : index
    %c0_13 = arith.constant 0 : index
    %18 = vector.load %arg4[%c0_11, %c0_12, %c0_13] : memref<1x4x128xf32, #tpu.memory_space<vmem>>, vector<1x4x128xf32>
    %19 = vector.shape_cast %18 : vector<1x4x128xf32> to vector<4x128xf32>
    %c128_i32_14 = arith.constant 128 : i32
    %20 = arith.cmpi sge, %3, %c128_i32_14 : i32
    %21 = arith.extui %20 : i1 to i32
    %c0_i32_15 = arith.constant 0 : i32
    %22 = arith.cmpi ne, %21, %c0_i32_15 : i32
    scf.if %22 {
      %c0_39 = arith.constant 0 : index
      %c256 = arith.constant 256 : index
      %51 = vector.load %arg9[%c0_39, %c256] : memref<4x384xf32, #tpu.memory_space<vmem>>, vector<4x128xf32>
      tpu.vector_store %arg9[%c0_39, %c256], %19 {strides = array<i32>} : memref<4x384xf32, #tpu.memory_space<vmem>>, vector<4x128xf32>,
    } else {
    }
    %c128_i32_16 = arith.constant 128 : i32
    %23 = arith.cmpi slt, %3, %c128_i32_16 : i32
    %24 = arith.extui %23 : i1 to i32
    %c0_i32_17 = arith.constant 0 : i32
    %25 = arith.cmpi ne, %24, %c0_i32_17 : i32
    scf.if %25 {
      %51 = tpu.iota {dimensions = array<i32: 1>} : vector<4x128xi32>
      %52 = vector.broadcast %3 : i32 to vector<4x128xi32>
      %53 = arith.cmpi slt, %51, %52 : vector<4x128xi32>
      %c0_i32_39 = arith.constant 0 : i32
      %54 = arith.sitofp %c0_i32_39 : i32 to f32
      %55 = vector.broadcast %54 : f32 to vector<4x128xf32>
      %56 = arith.select %53, %19, %55 : vector<4x128xi1>, vector<4x128xf32>
      %c0_40 = arith.constant 0 : index
      %c256 = arith.constant 256 : index
      %57 = vector.load %arg9[%c0_40, %c256] : memref<4x384xf32, #tpu.memory_space<vmem>>, vector<4x128xf32>
      tpu.vector_store %arg9[%c0_40, %c256], %56 {strides = array<i32>} : memref<4x384xf32, #tpu.memory_space<vmem>>, vector<4x128xf32>,
    } else {
    }
    %c0_18 = arith.constant 0 : index
    %c0_19 = arith.constant 0 : index
    %c0_20 = arith.constant 0 : index
    %26 = vector.load %arg5[%c0_18, %c0_19, %c0_20] : memref<3x8x4xf32, #tpu.memory_space<vmem>>, vector<1x8x4xf32>
    %27 = vector.shape_cast %26 : vector<1x8x4xf32> to vector<8x4xf32>
    %c0_21 = arith.constant 0 : index
    %c127 = arith.constant 127 : index
    %28 = vector.load %arg9[%c0_21, %c127] : memref<4x384xf32, #tpu.memory_space<vmem>>, vector<4x128xf32>
    %cst = arith.constant dense<0.000000e+00> : vector<8x128xf32>
    %29 = tpu.matmul %27, %28, %cst {dimension_numbers = #tpu.dot_dimension_numbers<[1], [0], [0], [1], [0, 0, 1, 1], [], []>} : vector<8x4xf32>, vector<4x128xf32>, vector<8x128xf32> -> vector<8x128xf32>
    %c1 = arith.constant 1 : index
    %c0_22 = arith.constant 0 : index
    %c0_23 = arith.constant 0 : index
    %30 = vector.load %arg5[%c1, %c0_22, %c0_23] : memref<3x8x4xf32, #tpu.memory_space<vmem>>, vector<1x8x4xf32>
    %31 = vector.shape_cast %30 : vector<1x8x4xf32> to vector<8x4xf32>
    %c0_24 = arith.constant 0 : index
    %c128 = arith.constant 128 : index
    %32 = vector.load %arg9[%c0_24, %c128] : memref<4x384xf32, #tpu.memory_space<vmem>>, vector<4x128xf32>
    %cst_25 = arith.constant dense<0.000000e+00> : vector<8x128xf32>
    %33 = tpu.matmul %31, %32, %cst_25 {dimension_numbers = #tpu.dot_dimension_numbers<[1], [0], [0], [1], [0, 0, 1, 1], [], []>} : vector<8x4xf32>, vector<4x128xf32>, vector<8x128xf32> -> vector<8x128xf32>
    %34 = arith.addf %29, %33 : vector<8x128xf32>
    %c2 = arith.constant 2 : index
    %c0_26 = arith.constant 0 : index
    %c0_27 = arith.constant 0 : index
    %35 = vector.load %arg5[%c2, %c0_26, %c0_27] : memref<3x8x4xf32, #tpu.memory_space<vmem>>, vector<1x8x4xf32>
    %36 = vector.shape_cast %35 : vector<1x8x4xf32> to vector<8x4xf32>
    %c0_28 = arith.constant 0 : index
    %c129 = arith.constant 129 : index
    %37 = vector.load %arg9[%c0_28, %c129] : memref<4x384xf32, #tpu.memory_space<vmem>>, vector<4x128xf32>
    %cst_29 = arith.constant dense<0.000000e+00> : vector<8x128xf32>
    %38 = tpu.matmul %36, %37, %cst_29 {dimension_numbers = #tpu.dot_dimension_numbers<[1], [0], [0], [1], [0, 0, 1, 1], [], []>} : vector<8x4xf32>, vector<4x128xf32>, vector<8x128xf32> -> vector<8x128xf32>
    %39 = arith.addf %34, %38 : vector<8x128xf32>
    %c0_30 = arith.constant 0 : index
    %c0_31 = arith.constant 0 : index
    %40 = vector.load %arg6[%c0_30, %c0_31] : memref<8x1xf32, #tpu.memory_space<vmem>>, vector<8x1xf32>
    %41 = vector.broadcast %40 : vector<8x1xf32> to vector<8x128xf32>
    %42 = arith.addf %39, %41 : vector<8x128xf32>
    %c0_32 = arith.constant 0 : index
    %c0_33 = arith.constant 0 : index
    %c0_34 = arith.constant 0 : index
    %43 = vector.load %arg7[%c0_32, %c0_33, %c0_34] : memref<1x8x128xf32, #tpu.memory_space<vmem>>, vector<1x8x128xf32>
    %44 = vector.shape_cast %43 : vector<1x8x128xf32> to vector<8x128xf32>
    %45 = arith.addf %42, %44 : vector<8x128xf32>
    %cst_35 = arith.constant 0.000000e+00 : f32
    %46 = vector.broadcast %cst_35 : f32 to vector<8x128xf32>
    %47 = arith.maximumf %45, %46 : vector<8x128xf32>
    %c0_36 = arith.constant 0 : index
    %c0_37 = arith.constant 0 : index
    %c0_38 = arith.constant 0 : index
    %48 = vector.load %arg8[%c0_36, %c0_37, %c0_38] : memref<1x8x128xf32, #tpu.memory_space<vmem>>, vector<1x8x128xf32>
    %49 = vector.shape_cast %48 : vector<1x8x128xf32> to vector<8x128xf32>
    %50 = vector.shape_cast %47 : vector<8x128xf32> to vector<1x8x128xf32>
    tpu.vector_store %arg8[%c0_36, %c0_37, %c0_38], %50 {strides = array<i32>} : memref<1x8x128xf32, #tpu.memory_space<vmem>>, vector<1x8x128xf32>,
    return
  }
  func.func @transform_0(%arg0: i32, %arg1: i32) -> (i32, i32, i32) {
    %c0_i32 = arith.constant 0 : i32
    %c0_i32_0 = arith.constant 0 : i32
    return %arg1, %c0_i32, %arg0 : i32, i32, i32
  }
  func.func @transform_1(%arg0: i32, %arg1: i32) -> (i32, i32, i32) {
    %c1_i32 = arith.constant 1 : i32
    %0 = arith.muli %arg0, %c1_i32 : i32
    %c1_i32_0 = arith.constant 1 : i32
    %1 = arith.subi %0, %c1_i32_0 : i32
    %c0_i32 = arith.constant 0 : i32
    %2 = arith.maxsi %1, %c0_i32 : i32
    %c0_i32_1 = arith.constant 0 : i32
    %c0_i32_2 = arith.constant 0 : i32
    return %arg1, %c0_i32_1, %2 : i32, i32, i32
  }
  func.func @transform_2(%arg0: i32, %arg1: i32) -> (i32, i32, i32) {
    %c1_i32 = arith.constant 1 : i32
    %0 = arith.addi %arg0, %c1_i32 : i32
    %c1_i32_0 = arith.constant 1 : i32
    %1 = arith.muli %0, %c1_i32_0 : i32
    %c0_i32 = arith.constant 0 : i32
    %2 = arith.minsi %1, %c0_i32 : i32
    %c0_i32_1 = arith.constant 0 : i32
    %c0_i32_2 = arith.constant 0 : i32
    return %arg1, %c0_i32_1, %2 : i32, i32, i32
  }
  func.func @transform_3(%arg0: i32, %arg1: i32) -> (i32, i32, i32) {
    %c0_i32 = arith.constant 0 : i32
    %c0_i32_0 = arith.constant 0 : i32
    %c0_i32_1 = arith.constant 0 : i32
    %c0_i32_2 = arith.constant 0 : i32
    return %c0_i32, %c0_i32_0, %c0_i32_1 : i32, i32, i32
  }
  func.func @transform_4(%arg0: i32, %arg1: i32) -> (i32, i32) {
    %c0_i32 = arith.constant 0 : i32
    %c0_i32_0 = arith.constant 0 : i32
    %c0_i32_1 = arith.constant 0 : i32
    return %c0_i32, %c0_i32_0 : i32, i32
  }
  func.func @transform_5(%arg0: i32, %arg1: i32) -> (i32, i32, i32) {
    %c0_i32 = arith.constant 0 : i32
    %c0_i32_0 = arith.constant 0 : i32
    return %arg1, %c0_i32, %arg0 : i32, i32, i32
  }
  func.func @transform_6(%arg0: i32, %arg1: i32) -> (i32, i32, i32) {
    %c0_i32 = arith.constant 0 : i32
    %c0_i32_0 = arith.constant 0 : i32
    return %arg1, %c0_i32, %arg0 : i32, i32, i32
  }
}

</mosaic_0001>

<bundles_post_ra>
// kernel: tpu_custom_call.1
= control target key start
LH: loop header
LB: loop body
LE: loop exit
PB: predicated region body
PF: predicated region fallthrough
CT: control target
= control target key end

     0   :  { %11 = vsyncpa [#allocation4], 0  ;;  %s1019_s0 = inlined_call_operand.vmem [shape: f32[2,4,16], index: 0, kind: input, shape index: {}]   ;;  %s1020_s1 = inlined_call_operand.vmem [shape: f32[2,4,16], index: 1, kind: input, shape index: {}]   ;;  %s1021_s2 = inlined_call_operand.vmem [shape: f32[2,4,16], index: 2, kind: input, shape index: {}]   ;;  %s1022_s3 = inlined_call_operand.vmem [shape: f32[3,8,4], index: 3, kind: input, shape index: {}]   ;;  %s1023_s4 = inlined_call_operand.vmem [shape: f32[8,1], index: 4, kind: input, shape index: {}]   ;;  %s1024_s5 = inlined_call_operand.vmem [shape: f32[2,8,16], index: 5, kind: input, shape index: {}]   ;;  %s1025_s6 = inlined_call_operand.hbm [shape: f32[2,8,16], index: 6, kind: output, shape index: {}]  }
   0x1   :  { %13 = vsyncpa [#allocation4 + $0x1], 0  ;;  %s897_s21 = smov 0   ;;  %s899_s1 = smov 0  }
   0x2   :  { %s901_s22 = smov 0   ;;  %s903_s2 = smov 0  }
   0x3   :  { %s905_s23 = smov 0   ;;  %s907_s24 = smov 0  }
   0x4 LB: > { %s695_s25 = sadd.s32 4294967295, %s856_s24   ;;  %s696_s26 = sadd.s32 4294967294, %s856_s24   ;;  %s856_s24 = sphi %s907_s24, %s19_s24   ;;  %s852_s23 = sphi %s905_s23, %s1032_s23   ;;  %s848_s2 = sphi %s903_s2, %s1031_s2   ;;  %s844_s22 = sphi %s901_s22, %s1030_s22   ;;  %s840_s1 = sphi %s899_s1, %s1029_s1   ;;  %s836_s21 = sphi %s897_s21, %s1028_s21  }
   0x5   : > { %s28_s27 = sadd.s32 1, %s852_s23  ;;  %s206_s28 = sadd.s32 1, %s844_s22 }
   0x6   : > { %p29_p0 = scmp.ge.s32.totalorder %s28_s27, 2  ;;  %p216_p1 = scmp.ne.s32.totalorder %s844_s22, %s840_s1 }
   0x7   : > { %p217_p2 = scmp.eq.s32.totalorder %s695_s25, 1  ;;  %p222_p3 = scmp.ne.s32.totalorder %s840_s1, %s836_s21 }
   0x8   : > { %s1034_s27 = smov (%p29_p0, %s28_s27), 0  ;;  %p223_p5 = scmp.eq.s32.totalorder %s696_s26, 1 }
   0x9   : > { %p937_p4 = por %p217_p2, %p216_p1  ;;  %s201_s30 = ssub.s32 %s852_s23, %s1034_s27 }
   0xa   : > { %p699_p6 = scmp.ge.s32.totalorder %s856_s24, 1  ;;  %p204_p7 = scmp.eq.s32.totalorder %s201_s30, 0 }
   0xb   : > { %p944_p8 = por %p223_p5, %p222_p3  ;;  %p299_p9 = scmp.lt.s32.totalorder %s856_s24, 3 }
   0xc   : > { %s950_s8 = scalar_select %p204_p7, %s844_s22, %s206_s28  }
   0xd   : > { %p300_p10 = pnand %p699_p6, %p299_p9 }
   0xe   : > { %p358_p11 = scmp.lt.s32.totalorder (!%p300_p10), %s848_s2, 1  ;;  %s859_s14 = smov (!%p300_p10), 1  }
   0xf   : > { %303 = sbr.rel (%p300_p10) target bundleno = 318 (0x13e), region = 44  ;;  %s860_s15 = smov (!%p300_p10), 127  }
  0x10   : > { %s355_s30 = sand.u32 (!%p300_p10), 1, %s840_s1   ;;  %s714_s12 = sshll.u32 (!%p300_p10), %s848_s2, 3 }
  0x11   : > { %s700_s11 = sshll.u32 (!%p300_p10), %s355_s30, 3  ;;  %s574_s18 = scalar_lea.hbm (!%p300_p10), %s1025_s6, %s714_s12 }
  0x12   : > { %s357_s19 = scalar_lea.vmem (!%p300_p10), [#allocation3], %s700_s11  ;;  %s798_s12 = scalar_lea.hbm (!%p300_p10), %s1025_s6, 16 }
  0x13   : > { %s576_s20 = sshll.u32 (!%p300_p10), %s357_s19, 4  ;;  %s577_s20 = int_to_ptr.vmem [resolvable:$true] %s576_s20 }
  0x14   : > { %v422_v0 = vlaneseq  ;;  %v858_v1 = vmov 0.0   ;;  %s954_s9 = scalar_select %p358_p11, %s848_s2, 1  ;;  %vm453_vm1 = vcmask 1043456   ;;  %v705_v12 = vld [vmem:[%s1022_s3 + $0x8] sm:$0xff]  ;;  %vm449_vm2 = vcmask 31744   ;;  %v551_v14 = vld [vmem:[%s1023_s4] sm:$0xff] }
  0x15   : > { %405 = vst [vmem:[#allocation2] sm:$0xf] %v858_v1  ;;  %v861_v13 = vmov 0   ;;  %vm485_vm3 = vcmask 7168   ;;  %v444_v18 = vld [vmem:[%s1022_s3] sm:$0xff]  ;;  %vm523_vm4 = vcmask 1039360  }
  0x16   : > { %v423_v2 = vand.u32 127, %v422_v0  ;;  %443 = vst [vmem:[#allocation2 + $0x8] sm:$0xf] %v858_v1  ;;  %s701_s10 = sshll.u32 %s954_s9, 2  ;;  %776 = vset.pattern.permute.xlu2 %v861_v13  ;;  %777 = vset.pattern.permute.xlu0 %v861_v13  ;;  %v710_v21 = vld [vmem:[%s1022_s3 + $0x10] sm:$0xff]  ;;  %s563_s2 = scalar_lea.sflag [#allocation4], %s355_s30 }
  0x17   : > { %s364_s13 = scalar_lea.vmem %s1019_s0, %s701_s10  ;;  %554 = vperm.xlu2 %776, %v551_v14   ;;  %s704_s10 = sshll.u32 %s954_s9, 3 }
  0x18   : > { %vm425_vm0 = vcmp.lt.s32.totalorder %v423_v2, 16  ;;  %v412_v3 = vld [vmem:[%s364_s13] sm:$0xf]  ;;  %s578_s9 = sshll.u32 %s574_s18, 4  ;;  %s579_s9 = int_to_ptr.hbm [resolvable:$true] %s578_s9 }
  0x19   : > { %v426_v4 = vsel %vm425_vm0, %v412_v3, 0.0  ;;  %s792_s25 = sshra.s32 %s579_s9, 4  ;;  %s793_s25 = int_to_ptr.hbm [resolvable:$true] %s792_s25 }
  0x1a   : > { %427 = vst [vmem:[#allocation2 + $0x4] sm:$0xf] %v426_v4  ;;  %s794_s26 = scalar_lea.hbm %s793_s25, 8  ;;  %p799_p1 = scmp.lt.s32.totalorder %s793_s25, %s1025_s6 }
  0x1b   : > { %p795_p12 = scmp.ne.s32.totalorder %s793_s25, %s794_s26  ;;  %p800_p2 = scmp.lt.s32.totalorder %s798_s12, %s794_s26 }
  0x1d   : > { %p796_p13 = pnand %p795_p12, %p937_p4  ;;  %p801_p3 = por %p800_p2, %p799_p1 }
  0x1f   : > { %p797_p0 = pneg %p796_p13 }
  0x21   : > { %v445_v5 = vld [vmem:[#allocation2] sm:$0xff]  ;;  %p802_p5 = pnand %p801_p3, %p797_p0 }
  0x22   : > { %478 = vst [vmem:[#allocation1] ss:$2 sm:$0xff] %v445_v5  ;;  %v514_v6 = vld [vmem:[#allocation2 + $0x4] sm:$0xff] }
  0x23   : > { %v448_v11 = vld [vmem:[#allocation2 + $0x4] sm:$0xf] }
  0x24   : > { %706 = vmatpush.msk.msra.mxu0 %vm453_vm1, %v448_v11 }
  0x25   : > { %707 = vmatmul.msk.f32.vlgmr.msra.gmra.mxu0 %vm449_vm2, %v705_v12 }
  0x29   : > { %v479_v7 = vld.sshfl [vmem:[#allocation1] sm:$0xff pattern:$0x75316420]  ;;  %v480_v8 = vld.sshfl [vmem:[#allocation1 + $0x8] sm:$0xff pattern:$0x75316420] }
  0x2a   : > { %481 = vrot.lane.b32.xlu1 %v479_v7, %s859_s14  ;;  %516 = vst [vmem:[#allocation1] ss:$2 sm:$0xff] %v514_v6 }
  0x31   : > { %v517_v9 = vld.sshfl [vmem:[#allocation1] sm:$0xff pattern:$0x75316420]  ;;  %v518_v10 = vld.sshfl [vmem:[#allocation1 + $0x8] sm:$0xff pattern:$0x75316420] }
  0x32   : > { %519 = vrot.lane.b32.xlu0 %v517_v9, %s860_s15  ;;  %483 = vrot.lane.b32.xlu1 %v480_v8, %s859_s14 }
  0x3a   : > { %521 = vrot.lane.b32.xlu0 %v518_v10, %s860_s15  ;;  %s397_s15 = scalar_lea.vmem %s1024_s5, %s704_s10 }
  0x3b   : > { %v558_v29 = vld [vmem:[%s397_s15] sm:$0xff] }
  0x71   : > { %v555_v27 = vpop.permute.xlu2 %554 }
  0x9c   : > { %v482_v15 = vpop.permute.xlu1 %481 }
  0xa2   : > { %v474_v23 = vpop.f32.mrf.mxu0 }
  0xa4   : > { %v520_v16 = vpop.permute.xlu0 %519  ;;  %v484_v17 = vpop.permute.xlu1 %483 }
  0xa5   : > { %v486_v19 = vsel %vm485_vm3, %v482_v15, %v484_v17 }
  0xa6   : > { %708 = vmatpush.msk.msra.mxu1 %vm453_vm1, %v486_v19 }
  0xa7   : > { %709 = vmatmul.msk.f32.vlgmr.msra.gmra.mxu1 %vm449_vm2, %v444_v18 }
  0xac   : > { %v522_v20 = vpop.permute.xlu0 %521 }
  0xad   : > { %v524_v22 = vsel %vm523_vm4, %v520_v16, %v522_v20 }
  0xae   : > { %711 = vmatpush.msk.msra.mxu2 %vm453_vm1, %v524_v22 }
  0xaf   : > { %712 = vmatmul.msk.f32.vlgmr.msra.gmra.mxu2 %vm449_vm2, %v710_v21 }
 0x124   : > { %v509_v24 = vpop.f32.mrf.mxu1 }
 0x125   : > { %v510_v25 = vadd.f32 %v509_v24, %v474_v23 }
 0x132   : > { %v547_v26 = vpop.f32.mrf.mxu2 }
 0x133   : > { %v550_v28 = vadd.f32 %v547_v26, %v510_v25 }
 0x135   : > { %v557_v30 = vadd.f32 %v555_v27, %v550_v28 }
 0x137   : > { %v559_v31 = vadd.f32 %v558_v29, %v557_v30 }
 0x139   : > { %v560_v32 = vmax.f32 %v559_v31, 0.0 }
 0x13b   : > { %561 = vst [vmem:[%s357_s19] sm:$0xff] %v560_v32 }
 0x13c   : > { %805 = shalt.err (!%p802_p5)
}
 0x13d   : > { %717 = dma.vmem_to_hbm [thread:$0]  (%p937_p4), %s577_s20, 128, %s579_s9, %s563_s2  }
 0x13e PF: > { %p723_p6 = scmp.ge.s32.totalorder %s856_s24, 2  ;;  %s590_s30 = sand.u32 1, %s836_s21  }
 0x13f   : > { %s591_s14 = scalar_lea.sflag [#allocation4], %s590_s30 }
 0x140   : > { %p720_p7 = pnand %p723_p6, %p944_p8 }
 0x142   : > { %p721_p9 = pneg %p720_p7 }
 0x144   : > { %831 = dma.done.wait (%p721_p9), %s591_s14, 128  }
 0x145   : > { %833 = vsyncadd (%p721_p9), %s591_s14, 4294967168  ;;  %s19_s24 = sadd.s32 1, %s856_s24   ;;  %s1028_s21 = smov %s840_s1 }
 0x146   : > { %p16_p10 = scmp.ge.s32.totalorder %s19_s24, 4   ;;  %s1029_s1 = smov %s844_s22 }
 0x147   : > { %s1030_s22 = smov %s950_s8  ;;  %s1031_s2 = smov %s852_s23 }
 0x148   : > { %s1032_s23 = smov %s1034_s27  ;;  %18 = sbr.rel (!%p16_p10) target bundleno = 4 (0x4), region = 114 }
 0x14d   :  { %597 = vsyncpa [#allocation4], 1 }
 0x14e   :  { %599 = vsyncpa [#allocation4 + $0x1], 1 }

</bundles_post_ra>
